<compile_context>
chip_gen: v5e
topology: v5e:2x2
jax: 0.10.0
libtpu: 0.0.40
codegen_flags: <defaults>
</compile_context>

<pallas_src>
import functools

import jax
import jax.numpy as jnp
from jax.experimental import pallas as pl
from jax.experimental.pallas import tpu as pltpu

_LANE = 128
_SUBLANE = 8
_MAX_TILE_BYTES = 2 * 1024 * 1024  # ~2 MiB per f32 input tile


def _projection_kernel(beta_ref, x_ref, o_ref, *, normalized):
    # beta_ref: (1,) f32 in SMEM; x_ref/o_ref: (TR, C) tiles in VMEM.
    beta = beta_ref[0]
    x = x_ref[...].astype(jnp.float32)
    t = jnp.tanh(beta * x)                      # EUP
    if normalized:
        th = jnp.tanh(0.5 * beta)               # scalar
        y = 0.5 * (th + t) * (1.0 / th)
    else:
        y = 0.5 * t + 0.5
    o_ref[...] = y.astype(o_ref.dtype)


def _ceil_to(v, m):
    return -(-v // m) * m


def projection_filter(x, beta, normalized=False):
    """Apply the projection (binarizer) filter elementwise to x (any shape)."""
    orig_shape = x.shape
    orig_dtype = x.dtype
    n = x.size

    # Lane-dense column width (multiple of 128): wide slabs -> unmasked vst.
    cols = 512 if n >= 512 * _SUBLANE else _LANE

    rows = max(1, -(-n // cols))
    # Row tile: multiple of 8, capped so one f32 tile is ~2 MiB. With
    # double-buffered input + output this stays well under the scoped VMEM
    # limits on every generation (v5e 16 MiB default, v7x 64 MiB physical).
    bytes_per_row = 4 * cols
    tr = max(_SUBLANE,
             min(512, (_MAX_TILE_BYTES // bytes_per_row) // _SUBLANE * _SUBLANE))
    tr = min(tr, _ceil_to(rows, _SUBLANE))
    rows_p = _ceil_to(rows, tr)
    n_p = rows_p * cols

    flat = x.reshape(-1)
    if n_p != n:
        flat = jnp.pad(flat, (0, n_p - n))
    x2d = flat.reshape(rows_p, cols)

    beta_arr = jnp.asarray(beta, dtype=jnp.float32).reshape(1)

    kernel = functools.partial(_projection_kernel, normalized=normalized)
    out2d = pl.pallas_call(
        kernel,
        out_shape=jax.ShapeDtypeStruct((rows_p, cols), orig_dtype),
        grid=(rows_p // tr,),
        in_specs=[
            pl.BlockSpec(memory_space=pltpu.MemorySpace.SMEM),   # beta scalar
            pl.BlockSpec((tr, cols), lambda i: (i, 0)),          # x tile
        ],
        out_specs=pl.BlockSpec((tr, cols), lambda i: (i, 0)),
        compiler_params=pltpu.CompilerParams(
            dimension_semantics=("parallel",),                    # v7x: 2 TCs
        ),
    )(beta_arr, x2d)

    out = out2d.reshape(-1)
    if n_p != n:
        out = out[:n]
    return out.reshape(orig_shape)


class ProjectionFilter:
    """Pallas/JAX port of the PyTorch ProjectionFilter module."""

    def __init__(self, beta=1, normalized=False):
        self.normalized = normalized
        self.beta = jnp.asarray([float(beta)], dtype=jnp.float32)

    def __call__(self, x):
        return self.forward(x)

    def forward(self, x):
        return projection_filter(x, self.beta, normalized=self.normalized)

    def update_params(self, scaler):
        self.beta = self.beta * scaler

    def reset_params(self, beta=1):
        self.beta = jnp.asarray([float(beta)], dtype=jnp.float32)


if __name__ == "__main__":
    key = jax.random.PRNGKey(0)
    x = jax.random.normal(key, (2, 4, 16, 16), dtype=jnp.float32)

    # Default (non-normalized) variant, beta = 1.
    filt = ProjectionFilter(beta=1, normalized=False)
    y = jax.block_until_ready(filt(x))
    ref = 0.5 * jnp.tanh(1.0 * x) + 0.5
    assert y.shape == x.shape and y.dtype == x.dtype
    assert jnp.allclose(y, ref, atol=1e-5, rtol=1e-5)

    # Normalized variant with an updated beta (exercises update_params path).
    filt_n = ProjectionFilter(beta=1, normalized=True)
    filt_n.update_params(4.0)            # beta -> 4
    yn = jax.block_until_ready(filt_n(x))
    b = 4.0
    ref_n = 0.5 * (jnp.tanh(0.5 * b) + jnp.tanh(b * x)) / jnp.tanh(0.5 * b)
    assert jnp.allclose(yn, ref_n, atol=1e-5, rtol=1e-5)

    print("KERNEL_OK")
</pallas_src>

<mosaic_0001>
module attributes {stable_mosaic.version = 11 : i64} {
  func.func @_projection_kernel(%arg0: i32, %arg1: memref<1xf32, #tpu.memory_space<smem>>, %arg2: memref<16x128xf32, #tpu.memory_space<vmem>>, %arg3: memref<16x128xf32, #tpu.memory_space<vmem>>) attributes {dimension_semantics = [#tpu.dimension_semantics<parallel>], iteration_bounds = array<i64: 1>, scalar_prefetch = 0 : i64, scratch_operands = 0 : i64, tpu.core_type = #tpu.core_type<tc>, window_params = [{transform_indices = @transform_0, window_bounds = array<i64: 1>}, {transform_indices = @transform_1, window_bounds = array<i64: 16, 128>}, {transform_indices = @transform_2, window_bounds = array<i64: 16, 128>}]} {
    %c0 = arith.constant 0 : index
    %0 = memref.load %arg1[%c0] : memref<1xf32, #tpu.memory_space<smem>>
    %c0_0 = arith.constant 0 : index
    %c0_1 = arith.constant 0 : index
    %1 = vector.load %arg2[%c0_0, %c0_1] : memref<16x128xf32, #tpu.memory_space<vmem>>, vector<16x128xf32>
    %2 = vector.broadcast %0 : f32 to vector<16x128xf32>
    %3 = arith.mulf %2, %1 : vector<16x128xf32>
    %4 = math.tanh %3 : vector<16x128xf32>
    %cst = arith.constant 5.000000e-01 : f32
    %5 = vector.broadcast %cst : f32 to vector<16x128xf32>
    %6 = arith.mulf %5, %4 : vector<16x128xf32>
    %cst_2 = arith.constant 5.000000e-01 : f32
    %7 = vector.broadcast %cst_2 : f32 to vector<16x128xf32>
    %8 = arith.addf %6, %7 : vector<16x128xf32>
    %c0_3 = arith.constant 0 : index
    %c0_4 = arith.constant 0 : index
    %9 = vector.load %arg3[%c0_3, %c0_4] : memref<16x128xf32, #tpu.memory_space<vmem>>, vector<16x128xf32>
    tpu.vector_store %arg3[%c0_3, %c0_4], %8 {strides = array<i32>} : memref<16x128xf32, #tpu.memory_space<vmem>>, vector<16x128xf32>,
    return
  }
  func.func @transform_0(%arg0: i32) -> i32 {
    %c0_i32 = arith.constant 0 : i32
    %c0_i32_0 = arith.constant 0 : i32
    return %c0_i32 : i32
  }
  func.func @transform_1(%arg0: i32) -> (i32, i32) {
    %c0_i32 = arith.constant 0 : i32
    %c0_i32_0 = arith.constant 0 : i32
    return %arg0, %c0_i32 : i32, i32
  }
  func.func @transform_2(%arg0: i32) -> (i32, i32) {
    %c0_i32 = arith.constant 0 : i32
    %c0_i32_0 = arith.constant 0 : i32
    return %arg0, %c0_i32 : i32, i32
  }
}

</mosaic_0001>

<bundles_post_ra>
// kernel: tpu_custom_call.1
= control target key start
LH: loop header
LB: loop body
LE: loop exit
PB: predicated region body
PF: predicated region fallthrough
CT: control target
= control target key end

     0   :  { %8 = vsyncpa [#allocation4], 0  ;;  %s150_s0 = inlined_call_operand.<no memory space> [shape: f32[1], index: 0, kind: input, shape index: {}]   ;;  %s151_s1 = inlined_call_operand.hbm [shape: f32[16,128], index: 1, kind: input, shape index: {}]   ;;  %s152_s2 = inlined_call_operand.hbm [shape: f32[16,128], index: 2, kind: output, shape index: {}]  }
   0x1   :  { %9 = vsyncpa [#allocation5], 0  ;;  %s16_s11 = sshll.u32 %s151_s1, 4  ;;  %s122_s12 = smov [#allocation3]   ;;  %s17_s11 = int_to_ptr.hbm [resolvable:$true] %s16_s11 }
   0x2   :  { %s18_s13 = sshll.u32 %s122_s12, 4  ;;  %s123_s14 = smov 128   ;;  %s19_s13 = int_to_ptr.vmem [resolvable:$true] %s18_s13 }
   0x3   :  { %s124_s15 = smov 8  }
   0x4   :  { %24 = dma.hbm_to_vmem [thread:$0]  %s17_s11, 256, %s19_s13, [#allocation4], %s123_s14, %s123_s14, %s124_s15  }
   0x5   :  { %118 = dma.done.wait [#allocation4], 256  }
   0x6   :  { %119 = vsyncadd [#allocation4], 4294967040  ;;  %v32_v0 = vstv %s150_s0  ;;  %v30_v1 = vld [vmem:[#allocation3] sm:$0xff]  ;;  %v31_v2 = vld [vmem:[#allocation3 + $0x8] sm:$0xff]  ;;  %s125_s1 = smov [#allocation6]   ;;  %s49_s21 = sshll.u32 %s152_s2, 4  ;;  %s50_s21 = int_to_ptr.hbm [resolvable:$true] %s49_s21 }
   0x7   :  { %v33_v3 = vmul.f32 %v32_v0, %v30_v1  ;;  %v34_v4 = vmul.f32 %v32_v0, %v31_v2  ;;  %s47_s18 = sshll.u32 %s125_s1, 4  ;;  %s48_s18 = int_to_ptr.vmem [resolvable:$true] %s47_s18 }
   0x9   :  { %66 = vtanh.f32 %v33_v3 }
   0xa   :  { %68 = vtanh.f32 %v34_v4 }
   0xf   :  { %v67_v5 = vpop.eup %66 }
  0x10   :  { %v69_v6 = vpop.eup %68  ;;  %v37_v7 = vmul.f32 0.5, %v67_v5 }
  0x11   :  { %v38_v8 = vmul.f32 0.5, %v69_v6 }
  0x12   :  { %v39_v9 = vadd.f32 0.5, %v37_v7 }
  0x13   :  { %v40_v10 = vadd.f32 0.5, %v38_v8 }
  0x14   :  { %41 = vst [vmem:[#allocation6] sm:$0xff] %v39_v9 }
  0x15   :  { %42 = vst [vmem:[#allocation6 + $0x8] sm:$0xff] %v40_v10 }
  0x16   :  { %55 = dma.vmem_to_hbm [thread:$0]  %s48_s18, 256, %s50_s21, [#allocation5], %s123_s14, %s123_s14, %s124_s15  }
  0x17   :  { %120 = dma.done.wait [#allocation5], 256  }
  0x18   :  { %121 = vsyncadd [#allocation5], 4294967040 }
  0x19   :  { %60 = vsyncpa [#allocation4], 1 }
  0x1a   :  { %61 = vsyncpa [#allocation5], 1 }

</bundles_post_ra>
